<compile_context>
chip_gen: v7x
topology: tpu7x:2x2x1
jax: 0.10.0
libtpu: 0.0.40
codegen_flags: <defaults>
</compile_context>

<pallas_src>
import math

import jax
import jax.numpy as jnp
from jax.experimental import pallas as pl
from jax.experimental.pallas import tpu as pltpu

HIDDEN_1 = 400
HIDDEN_2 = 300


def _critic_kernel(x_ref, w1_ref, b1_ref, w2_hbm_ref, b2_ref, w3_ref, b3_ref,
                   q_ref, w2_vmem, dma_sem):
    # Start streaming the dominant weight (layer-2 per-branch stack, ~480 KB
    # bf16) HBM -> VMEM so its DMA hides under the layer-1 compute.
    w2_copy = pltpu.make_async_copy(w2_hbm_ref, w2_vmem, dma_sem)
    w2_copy.start()

    # Layer 1 for BOTH branches fused along lanes:
    #   (B, S+A) @ (S+A, 800); cols 0:400 = fc_1 branch, cols 400:800 = fc_4.
    x = x_ref[...].astype(jnp.bfloat16)
    h = jnp.dot(x, w1_ref[...], preferred_element_type=jnp.float32) + b1_ref[...]
    h = jnp.maximum(h, 0.0)                       # f32 ReLU (VPU-friendly on v5e)
    h1 = h[:, :HIDDEN_1].astype(jnp.bfloat16)     # branch 1 activations (B, 400)
    h2 = h[:, HIDDEN_1:].astype(jnp.bfloat16)     # branch 2 activations (B, 400)

    # Layer 2: two dense (400, 300) dots (no block-diagonal zeros).
    w2_copy.wait()
    g1 = jnp.dot(h1, w2_vmem[0], preferred_element_type=jnp.float32) + b2_ref[0]
    g2 = jnp.dot(h2, w2_vmem[1], preferred_element_type=jnp.float32) + b2_ref[1]
    g1 = jnp.maximum(g1, 0.0).astype(jnp.bfloat16)
    g2 = jnp.maximum(g2, 0.0).astype(jnp.bfloat16)

    # Layer 3: two dense (300, 1) dots -> lane-dense (B, 2) output.
    q1 = jnp.dot(g1, w3_ref[0], preferred_element_type=jnp.float32)   # (B, 1)
    q2 = jnp.dot(g2, w3_ref[1], preferred_element_type=jnp.float32)   # (B, 1)
    q_ref[...] = jnp.concatenate([q1, q2], axis=1) + b3_ref[...]


def critic_forward(state, action, packed):
    """Pallas equivalent of Critic.forward -> (q1, q2), each (B, 1) f32."""
    state = state.astype(jnp.float32)
    action = action.astype(jnp.float32)
    x = jnp.concatenate([state, action], axis=1)          # (B, S+A), tiny concat
    batch = x.shape[0]
    in_dim = x.shape[1]

    pad = (-batch) % 8                                    # sublane alignment
    if pad:
        x = jnp.pad(x, ((0, pad), (0, 0)))
    padded_batch = batch + pad

    args = (x, packed["w1"], packed["b1"], packed["w2"], packed["b2"],
            packed["w3"], packed["b3"])

    # Advisory cost estimate for XLA's scheduler around this tiny custom call.
    flops = 2 * padded_batch * (in_dim * 2 * HIDDEN_1
                                + 2 * HIDDEN_1 * HIDDEN_2
                                + 2 * HIDDEN_2 * 1)
    bytes_accessed = int(sum(int(a.size) * a.dtype.itemsize for a in args)
                         + padded_batch * 2 * 4)
    cost = pl.CostEstimate(flops=int(flops), transcendentals=0,
                           bytes_accessed=bytes_accessed)

    # Small problem: single program, full-array blocks, no grid.  Everything
    # except the layer-2 weight stack is auto-DMA'd to VMEM; the layer-2 stack
    # stays in HBM (pl.ANY) and is streamed manually inside the kernel.
    q = pl.pallas_call(
        _critic_kernel,
        out_shape=jax.ShapeDtypeStruct((padded_batch, 2), jnp.float32),
        in_specs=[
            pl.BlockSpec(memory_space=pltpu.VMEM),   # x
            pl.BlockSpec(memory_space=pltpu.VMEM),   # w1 (S+A, 800) bf16
            pl.BlockSpec(memory_space=pltpu.VMEM),   # b1 (1, 800) f32
            pl.BlockSpec(memory_space=pl.ANY),       # w2 (2, 400, 300) bf16, manual DMA
            pl.BlockSpec(memory_space=pltpu.VMEM),   # b2 (2, 1, 300) f32
            pl.BlockSpec(memory_space=pltpu.VMEM),   # w3 (2, 300, 1) bf16
            pl.BlockSpec(memory_space=pltpu.VMEM),   # b3 (1, 2) f32
        ],
        out_specs=pl.BlockSpec(memory_space=pltpu.VMEM),
        scratch_shapes=[
            pltpu.VMEM((2, HIDDEN_1, HIDDEN_2), jnp.bfloat16),   # w2 landing buffer
            pltpu.SemaphoreType.DMA,
        ],
        cost_estimate=cost,
    )(*args)

    q = q[:batch]
    return q[:, 0:1], q[:, 1:2]


def init_critic_params(key, states_dimension, actions_dimension):
    """Per-layer f32 params mimicking nn.Linear default init.

    Weights stored (in_features, out_features); biases (1, out_features)."""
    in_dim = states_dimension + actions_dimension
    dims = [
        ("w1", "b1", in_dim, HIDDEN_1),
        ("w2", "b2", HIDDEN_1, HIDDEN_2),
        ("w3", "b3", HIDDEN_2, 1),
        ("w4", "b4", in_dim, HIDDEN_1),
        ("w5", "b5", HIDDEN_1, HIDDEN_2),
        ("w6", "b6", HIDDEN_2, 1),
    ]
    params = {}
    for wname, bname, fan_in, fan_out in dims:
        key, kw, kb = jax.random.split(key, 3)
        bound = 1.0 / math.sqrt(fan_in)
        params[wname] = jax.random.uniform(
            kw, (fan_in, fan_out), jnp.float32, minval=-bound, maxval=bound)
        params[bname] = jax.random.uniform(
            kb, (1, fan_out), jnp.float32, minval=-bound, maxval=bound)
    return params


def pack_critic_params(params):
    """Fuse twin branches without explicit zeros; cast weights to bf16.

    Layer 1: [w1 | w4] -> (S+A, 800) single dot, branch 1 in cols 0:400.
    Layer 2: dense per-branch stack (2, 400, 300)   (fc_2, fc_5).
    Layer 3: dense per-branch stack (2, 300, 1)     (fc_3, fc_6).
    Biases stay f32 (added after the f32-accumulated matmul)."""
    f32, bf16 = jnp.float32, jnp.bfloat16
    return {
        "w1": jnp.concatenate([params["w1"], params["w4"]], axis=1).astype(bf16),
        "b1": jnp.concatenate([params["b1"], params["b4"]], axis=1).astype(f32),
        "w2": jnp.stack([params["w2"], params["w5"]], axis=0).astype(bf16),
        "b2": jnp.stack([params["b2"], params["b5"]], axis=0).astype(f32),
        "w3": jnp.stack([params["w3"], params["w6"]], axis=0).astype(bf16),
        "b3": jnp.concatenate([params["b3"], params["b6"]], axis=1).astype(f32),
    }


def critic_forward_reference_f32(state, action, params):
    """Original (un-fused, pure f32) twin-MLP forward, for semantic checking."""
    x = jnp.concatenate([state, action], axis=1).astype(jnp.float32)
    h = jnp.maximum(x @ params["w1"] + params["b1"], 0.0)
    h = jnp.maximum(h @ params["w2"] + params["b2"], 0.0)
    q1 = h @ params["w3"] + params["b3"]
    g = jnp.maximum(x @ params["w4"] + params["b4"], 0.0)
    g = jnp.maximum(g @ params["w5"] + params["b5"], 0.0)
    q2 = g @ params["w6"] + params["b6"]
    return q1, q2


def critic_forward_reference_packed(state, action, packed):
    """Pure-JAX model of the exact kernel numerics (bf16 dot inputs, f32 acc)."""
    x = jnp.concatenate([state, action], axis=1).astype(jnp.bfloat16)
    h = jnp.dot(x, packed["w1"], preferred_element_type=jnp.float32) + packed["b1"]
    h = jnp.maximum(h, 0.0)
    h1 = h[:, :HIDDEN_1].astype(jnp.bfloat16)
    h2 = h[:, HIDDEN_1:].astype(jnp.bfloat16)
    g1 = jnp.maximum(jnp.dot(h1, packed["w2"][0],
                             preferred_element_type=jnp.float32) + packed["b2"][0], 0.0)
    g2 = jnp.maximum(jnp.dot(h2, packed["w2"][1],
                             preferred_element_type=jnp.float32) + packed["b2"][1], 0.0)
    q1 = jnp.dot(g1.astype(jnp.bfloat16), packed["w3"][0],
                 preferred_element_type=jnp.float32)
    q2 = jnp.dot(g2.astype(jnp.bfloat16), packed["w3"][1],
                 preferred_element_type=jnp.float32)
    q = jnp.concatenate([q1, q2], axis=1) + packed["b3"]
    return q[:, 0:1], q[:, 1:2]


if __name__ == "__main__":
    states_dimension = 24
    actions_dimension = 8
    batch = 8

    key = jax.random.PRNGKey(0)
    key, k_state, k_action = jax.random.split(key, 3)
    state = jax.random.normal(k_state, (batch, states_dimension), jnp.float32)
    action = jax.random.normal(k_action, (batch, actions_dimension), jnp.float32)

    params = init_critic_params(key, states_dimension, actions_dimension)
    packed = pack_critic_params(params)

    q1, q2 = critic_forward(state, action, packed)
    q1 = jax.block_until_ready(q1)
    q2 = jax.block_until_ready(q2)
    assert q1.shape == (batch, 1) and q2.shape == (batch, 1)

    # Tight check against a pure-JAX model of the kernel's exact numeric path.
    q1_p, q2_p = critic_forward_reference_packed(state, action, packed)
    assert jnp.allclose(q1, q1_p, atol=5e-3, rtol=5e-3)
    assert jnp.allclose(q2, q2_p, atol=5e-3, rtol=5e-3)

    # Looser check against the original f32 forward (only bf16 weight/input
    # rounding separates the two paths).
    q1_f, q2_f = critic_forward_reference_f32(state, action, params)
    assert jnp.allclose(q1, q1_f, atol=5e-2, rtol=5e-2)
    assert jnp.allclose(q2, q2_f, atol=5e-2, rtol=5e-2)

    print("KERNEL_OK")
</pallas_src>

<mosaic_0001>
module attributes {stable_mosaic.version = 11 : i64} {
  func.func @_critic_kernel(%arg0: memref<8x32xf32, #tpu.memory_space<vmem>>, %arg1: memref<32x800xbf16, #tpu.memory_space<vmem>>, %arg2: memref<1x800xf32, #tpu.memory_space<vmem>>, %arg3: memref<2x400x300xbf16, #tpu.memory_space<any>>, %arg4: memref<2x1x300xf32, #tpu.memory_space<vmem>>, %arg5: memref<2x300x1xbf16, #tpu.memory_space<vmem>>, %arg6: memref<1x2xf32, #tpu.memory_space<vmem>>, %arg7: memref<8x2xf32, #tpu.memory_space<vmem>>, %arg8: memref<2x400x300xbf16, #tpu.memory_space<vmem>>, %arg9: memref<!tpu.dma_semaphore, #tpu.memory_space<semaphore_mem>>) attributes {dimension_semantics = [], scalar_prefetch = 0 : i64, scratch_operands = 2 : i64, tpu.core_type = #tpu.core_type<tc>} {
    tpu.enqueue_dma source(%arg3 : memref<2x400x300xbf16, #tpu.memory_space<any>>) target(%arg8 : memref<2x400x300xbf16, #tpu.memory_space<vmem>>) target_semaphore(%arg9 : memref<!tpu.dma_semaphore, #tpu.memory_space<semaphore_mem>>)
    %c0 = arith.constant 0 : index
    %c0_0 = arith.constant 0 : index
    %0 = vector.load %arg0[%c0, %c0_0] : memref<8x32xf32, #tpu.memory_space<vmem>>, vector<8x32xf32>
    %1 = arith.truncf %0 : vector<8x32xf32> to vector<8x32xbf16>
    %c0_1 = arith.constant 0 : index
    %c0_2 = arith.constant 0 : index
    %2 = vector.load %arg1[%c0_1, %c0_2] : memref<32x800xbf16, #tpu.memory_space<vmem>>, vector<32x800xbf16>
    %cst = arith.constant dense<0.000000e+00> : vector<8x800xf32>
    %3 = tpu.matmul %1, %2, %cst {dimension_numbers = #tpu.dot_dimension_numbers<[1], [0], [0], [1], [0, 0, 1, 1], [], []>} : vector<8x32xbf16>, vector<32x800xbf16>, vector<8x800xf32> -> vector<8x800xf32>
    %c0_3 = arith.constant 0 : index
    %c0_4 = arith.constant 0 : index
    %4 = vector.load %arg2[%c0_3, %c0_4] : memref<1x800xf32, #tpu.memory_space<vmem>>, vector<1x800xf32>
    %5 = vector.broadcast %4 : vector<1x800xf32> to vector<8x800xf32>
    %6 = arith.addf %3, %5 : vector<8x800xf32>
    %cst_5 = arith.constant 0.000000e+00 : f32
    %7 = vector.broadcast %cst_5 : f32 to vector<8x800xf32>
    %8 = arith.maximumf %6, %7 : vector<8x800xf32>
    %9 = vector.extract_strided_slice %8 {offsets = [0, 0], sizes = [8, 400], strides = [1, 1]} : vector<8x800xf32> to vector<8x400xf32>
    %10 = arith.truncf %9 : vector<8x400xf32> to vector<8x400xbf16>
    %11 = vector.extract_strided_slice %8 {offsets = [0, 400], sizes = [8, 400], strides = [1, 1]} : vector<8x800xf32> to vector<8x400xf32>
    %12 = arith.truncf %11 : vector<8x400xf32> to vector<8x400xbf16>
    tpu.wait_dma2 semaphore(%arg9 : memref<!tpu.dma_semaphore, #tpu.memory_space<semaphore_mem>>) src(%arg3 : memref<2x400x300xbf16, #tpu.memory_space<any>>) dst(%arg8 : memref<2x400x300xbf16, #tpu.memory_space<vmem>>)
    %c0_6 = arith.constant 0 : index
    %c0_7 = arith.constant 0 : index
    %c0_8 = arith.constant 0 : index
    %13 = vector.load %arg8[%c0_6, %c0_7, %c0_8] : memref<2x400x300xbf16, #tpu.memory_space<vmem>>, vector<1x400x300xbf16>
    %14 = vector.shape_cast %13 : vector<1x400x300xbf16> to vector<400x300xbf16>
    %cst_9 = arith.constant dense<0.000000e+00> : vector<8x300xf32>
    %15 = tpu.matmul %10, %14, %cst_9 {dimension_numbers = #tpu.dot_dimension_numbers<[1], [0], [0], [1], [0, 0, 1, 1], [], []>} : vector<8x400xbf16>, vector<400x300xbf16>, vector<8x300xf32> -> vector<8x300xf32>
    %c0_10 = arith.constant 0 : index
    %c0_11 = arith.constant 0 : index
    %c0_12 = arith.constant 0 : index
    %16 = vector.load %arg4[%c0_10, %c0_11, %c0_12] : memref<2x1x300xf32, #tpu.memory_space<vmem>>, vector<1x1x300xf32>
    %17 = vector.shape_cast %16 : vector<1x1x300xf32> to vector<1x300xf32>
    %18 = vector.broadcast %17 : vector<1x300xf32> to vector<8x300xf32>
    %19 = arith.addf %15, %18 : vector<8x300xf32>
    %c1 = arith.constant 1 : index
    %c0_13 = arith.constant 0 : index
    %c0_14 = arith.constant 0 : index
    %20 = vector.load %arg8[%c1, %c0_13, %c0_14] : memref<2x400x300xbf16, #tpu.memory_space<vmem>>, vector<1x400x300xbf16>
    %21 = vector.shape_cast %20 : vector<1x400x300xbf16> to vector<400x300xbf16>
    %cst_15 = arith.constant dense<0.000000e+00> : vector<8x300xf32>
    %22 = tpu.matmul %12, %21, %cst_15 {dimension_numbers = #tpu.dot_dimension_numbers<[1], [0], [0], [1], [0, 0, 1, 1], [], []>} : vector<8x400xbf16>, vector<400x300xbf16>, vector<8x300xf32> -> vector<8x300xf32>
    %c1_16 = arith.constant 1 : index
    %c0_17 = arith.constant 0 : index
    %c0_18 = arith.constant 0 : index
    %23 = vector.load %arg4[%c1_16, %c0_17, %c0_18] : memref<2x1x300xf32, #tpu.memory_space<vmem>>, vector<1x1x300xf32>
    %24 = vector.shape_cast %23 : vector<1x1x300xf32> to vector<1x300xf32>
    %25 = vector.broadcast %24 : vector<1x300xf32> to vector<8x300xf32>
    %26 = arith.addf %22, %25 : vector<8x300xf32>
    %cst_19 = arith.constant 0.000000e+00 : f32
    %27 = vector.broadcast %cst_19 : f32 to vector<8x300xf32>
    %28 = arith.maximumf %19, %27 : vector<8x300xf32>
    %29 = arith.truncf %28 : vector<8x300xf32> to vector<8x300xbf16>
    %cst_20 = arith.constant 0.000000e+00 : f32
    %30 = vector.broadcast %cst_20 : f32 to vector<8x300xf32>
    %31 = arith.maximumf %26, %30 : vector<8x300xf32>
    %32 = arith.truncf %31 : vector<8x300xf32> to vector<8x300xbf16>
    %c0_21 = arith.constant 0 : index
    %c0_22 = arith.constant 0 : index
    %c0_23 = arith.constant 0 : index
    %33 = vector.load %arg5[%c0_21, %c0_22, %c0_23] : memref<2x300x1xbf16, #tpu.memory_space<vmem>>, vector<1x300x1xbf16>
    %34 = vector.shape_cast %33 : vector<1x300x1xbf16> to vector<300x1xbf16>
    %cst_24 = arith.constant dense<0.000000e+00> : vector<8x1xf32>
    %35 = tpu.matmul %29, %34, %cst_24 {dimension_numbers = #tpu.dot_dimension_numbers<[1], [0], [0], [1], [0, 0, 1, 1], [], []>} : vector<8x300xbf16>, vector<300x1xbf16>, vector<8x1xf32> -> vector<8x1xf32>
    %c1_25 = arith.constant 1 : index
    %c0_26 = arith.constant 0 : index
    %c0_27 = arith.constant 0 : index
    %36 = vector.load %arg5[%c1_25, %c0_26, %c0_27] : memref<2x300x1xbf16, #tpu.memory_space<vmem>>, vector<1x300x1xbf16>
    %37 = vector.shape_cast %36 : vector<1x300x1xbf16> to vector<300x1xbf16>
    %cst_28 = arith.constant dense<0.000000e+00> : vector<8x1xf32>
    %38 = tpu.matmul %32, %37, %cst_28 {dimension_numbers = #tpu.dot_dimension_numbers<[1], [0], [0], [1], [0, 0, 1, 1], [], []>} : vector<8x300xbf16>, vector<300x1xbf16>, vector<8x1xf32> -> vector<8x1xf32>
    %39 = tpu.concatenate %35, %38 in 1 : vector<8x1xf32>, vector<8x1xf32> -> vector<8x2xf32>
    %c0_29 = arith.constant 0 : index
    %c0_30 = arith.constant 0 : index
    %40 = vector.load %arg6[%c0_29, %c0_30] : memref<1x2xf32, #tpu.memory_space<vmem>>, vector<1x2xf32>
    %41 = vector.broadcast %40 : vector<1x2xf32> to vector<8x2xf32>
    %42 = arith.addf %39, %41 : vector<8x2xf32>
    %c0_31 = arith.constant 0 : index
    %c0_32 = arith.constant 0 : index
    %43 = vector.load %arg7[%c0_31, %c0_32] : memref<8x2xf32, #tpu.memory_space<vmem>>, vector<8x2xf32>
    tpu.vector_store %arg7[%c0_31, %c0_32], %42 {strides = array<i32>} : memref<8x2xf32, #tpu.memory_space<vmem>>, vector<8x2xf32>,
    return
  }
}

</mosaic_0001>

<bundles_post_ra>
// kernel: tpu_custom_call.1
= control target key start
LH: loop header
LB: loop body
LE: loop exit
PB: predicated region body
PF: predicated region fallthrough
CT: control target
= control target key end

     0   :  { %s29_s24 = sld [smem:[#allocation0]]   ;;  %s1743_s25 = smov [#allocation2]   ;;  %v1744_v0 = vmov 0   ;;  %vm187_vm0 = vcmask 261120   ;;  %v1754_v14 = vmov 0.0   ;;  %vm1755_vm1 = vmmov 0   ;;  %s2065_s0 = inlined_call_operand.vmem [shape: f32[8,32], index: 0, kind: input, shape index: {}]   ;;  %s2066_s1 = inlined_call_operand.vmem [shape: bf16[32,800], index: 1, kind: input, shape index: {}]   ;;  %s2067_s2 = inlined_call_operand.vmem [shape: f32[1,800], index: 2, kind: input, shape index: {}]   ;;  %s2068_s3 = inlined_call_operand.hbm [shape: bf16[2,400,300], index: 3, kind: input, shape index: {}]   ;;  %s2069_s4 = inlined_call_operand.vmem [shape: f32[2,1,300], index: 4, kind: input, shape index: {}]   ;;  %s2070_s5 = inlined_call_operand.vmem [shape: bf16[2,300,1], index: 5, kind: input, shape index: {}]   ;;  %s2071_s6 = inlined_call_operand.vmem [shape: f32[1,2], index: 6, kind: input, shape index: {}]   ;;  %s2072_s7 = inlined_call_operand.vmem [shape: f32[8,2], index: 7, kind: output, shape index: {}]  }
   0x1   :  { %s1798_s26 = sshll.u32 %s1743_s25, 4  ;;  %223 = vmatprep.mubr.bf16.mxu0 %v1744_v0  ;;  %264 = vmatprep.mubr.bf16.mxu1 %v1744_v0  ;;  %s1745_s27 = smov 384   ;;  %v80_v18 = vlaneseq  ;;  %s38_s26 = int_to_ptr.vmem [resolvable:$true] %s1798_s26 }
   0x2   :  { %41 = sst [smem:[#allocation5]] %s1745_s27  ;;  %s1746_s28 = smov 3  }
   0x3   :  { %43 = sst [smem:[#allocation5 + $0x1]] %s1745_s27  ;;  %s1747_s29 = smov 64   ;;  %v81_v19 = vshrl.u32 %v80_v18, 7 }
   0x4   :  { %45 = sst [smem:[#allocation5 + $0x2]] %s1746_s28  ;;  %s1748_s8 = smov 128  }
   0x5   :  { %47 = sst [smem:[#allocation5 + $0x3]] %s1747_s29  ;;  %s1749_s10 = smov 2   ;;  %v1860_v20 = vsub.s32 0, %v81_v19  ;;  %v1862_v21 = vsub.s32 2, %v81_v19  ;;  %v1867_v23 = vsub.s32 1, %v81_v19  ;;  %v94_v24 = vsub.s32 3, %v81_v19 }
   0x6   :  { %s1424_s30 = sshll.u32 %s29_s24, 26  ;;  %49 = sst [smem:[#allocation5 + $0x4]] %s1748_s8  ;;  %v98_v35 = vsub.s32 4, %v81_v19  ;;  %v106_v36 = vsub.s32 6, %v81_v19  ;;  %v102_v41 = vsub.s32 5, %v81_v19 }
   0x7   :  { %s1425_s9 = sadd.s32 134217728, %s1424_s30  ;;  %51 = sst [smem:[#allocation5 + $0x5]] %s1749_s10 }
   0x8   :  { %s1750_s11 = smov 192   ;;  %55 = sst [smem:[#allocation5 + $0x7]] %s1747_s29 }
   0x9   :  { %53 = sst [smem:[#allocation5 + $0x6]] %s1750_s11  ;;  %s1751_s12 = smov 4  }
   0xa   :  { %57 = sst [smem:[#allocation5 + $0x8]] %s1751_s12  ;;  %s1752_s13 = smov [#allocation3]  }
   0xb   :  { %s1753_s14 = smov [#allocation4]  }
   0xc   :  { %59 = dma.general %s2068_s3, 19200, %s38_s26, %s1752_s13, %s1753_s14, [#allocation5], %s1425_s9, 0  }
   0xd   :  { %v1683_v1 = vld [vmem:[%s2066_s1 + $0x4] ss:$28 sps:$4 sm:$0xff]   ;;  %v1685_v2 = vld [vmem:[%s2066_s1 + $0xc] ss:$28 sps:$4 sm:$0xff]   ;;  %v1689_v5 = vld [vmem:[%s2066_s1 + $0x3c] ss:$28 sps:$4 sm:$0xff]  }
   0xe   :  { %191 = vmatprep.subr.bf16.mxu0 %v1683_v1  ;;  %v1687_v3 = vld [vmem:[%s2066_s1] ss:$28 sps:$4 sm:$0xff]   ;;  %v1688_v4 = vld [vmem:[%s2066_s1 + $0x8] ss:$28 sps:$4 sm:$0xff]   ;;  %232 = vmatprep.subr.bf16.mxu1 %v1685_v2  ;;  %v1693_v7 = vld [vmem:[%s2066_s1 + $0x38] ss:$28 sps:$4 sm:$0xff]  }
   0xf   :  { %192 = vmatpush1.bf16.msra.mxu0 %v1687_v3  ;;  %233 = vmatpush1.bf16.msra.mxu1 %v1688_v4  ;;  %v1691_v6 = vld [vmem:[%s2066_s1 + $0x44] ss:$28 sps:$4 sm:$0xff]   ;;  %v1697_v10 = vld [vmem:[%s2066_s1 + $0x14] ss:$28 sps:$4 sm:$0xff]   ;;  %v1701_v15 = vld [vmem:[%s2066_s1 + $0x4c] ss:$28 sps:$4 sm:$0xff]  }
  0x10   :  { %193 = vmatprep.subr.bf16.mxu0 %v1689_v5  ;;  %v1694_v8 = vld [vmem:[%s2066_s1 + $0x40] ss:$28 sps:$4 sm:$0xff]   ;;  %234 = vmatprep.subr.bf16.mxu1 %v1691_v6  ;;  %v1695_v12 = vld [vmem:[%s2066_s1 + $0x10] ss:$28 sps:$4 sm:$0xff]   ;;  %v1698_v13 = vld [vmem:[%s2066_s1 + $0x18] ss:$28 sps:$4 sm:$0xff]  }
  0x11   :  { %v60_v9 = vld [vmem:[%s2065_s0] sm:$0xff]  ;;  %v1702_v17 = vld [vmem:[%s2066_s1 + $0x50] ss:$28 sps:$4 sm:$0xff]  }
  0x12   :  { %v61_v11 = vpack.c.bf16 %v60_v9, %v60_v9  ;;  %v1699_v16 = vld [vmem:[%s2066_s1 + $0x48] ss:$28 sps:$4 sm:$0xff]  }
  0x13   :  { %194 = vmatpush1.bf16.msra.mxu0 %v1693_v7  ;;  %235 = vmatpush1.bf16.msra.mxu1 %v1694_v8  ;;  %v78_v22 = vld [vmem:[%s2067_s2] sm:$0x7f] }
  0x14   :  { %273 = vmatprep.subr.bf16.mxu0 %v1697_v10  ;;  %1628 = vmatprep.subr.bf16.mxu1 %v1754_v14  ;;  %v83_v25 = vrot.slane %v78_v22, %v1860_v20  ;;  %v91_v26 = vrot.slane %v78_v22, %v1862_v21  ;;  %v87_v27 = vrot.slane %v78_v22, %v1867_v23 }
  0x15   :  { %v95_v28 = vrot.slane %v78_v22, %v94_v24  ;;  %v99_v50 = vrot.slane %v78_v22, %v98_v35  ;;  %v107_v51 = vrot.slane %v78_v22, %v106_v36  ;;  %v103_v54 = vrot.slane %v78_v22, %v102_v41 }
  0x16   :  { %1440 = vmatmul.mubr.msk.bf16.vlgmr.msra.gmra.mrb[0].mxu0 %vm187_vm0, %v61_v11  ;;  %1441 = vmatmul.mubr.msk.bf16.vlgmr.msra.gmra.mrb[0].mxu1 %vm187_vm0, %v61_v11 }
  0x17   :  { %274 = vmatpush1.bf16.msra.mxu0 %v1695_v12  ;;  %1629 = vmatpush3.bf16.msra.mxu1 %v1698_v13 }
  0x18   :  { %275 = vmatprep.subr.bf16.mxu0 %v1701_v15  ;;  %1630 = vmatprep.subr.bf16.mxu1 %v1754_v14 }
  0x19   :  { %305 = vmatprep.mubr.bf16.mxu0 %v1744_v0  ;;  %1632 = vmatprep.mubr.msk.bf16.mxu1 %vm1755_vm1, %v1754_v14 }
  0x1b   :  { %276 = vmatpush1.bf16.msra.mxu0 %v1699_v16  ;;  %1631 = vmatpush3.bf16.msra.mxu1 %v1702_v17 }
  0x1e   :  { %1442 = vmatmul.mubr.msk.bf16.vlgmr.msra.gmra.mrb[4].mxu0 %vm187_vm0, %v61_v11  ;;  %1633 = vmatmul.mubr.msk.bf16.vlgmr.msra.gmra.mrb[4].mxu1 %vm187_vm0, %v61_v11 }
  0xe9   :  { %v225_v29 = vpop.f32.mrb[0].mxu0  ;;  %v266_v30 = vpop.f32.mrb[0].mxu1 }
  0xea   :  { %v226_v31 = vadd.f32 %v225_v29, %v83_v25  ;;  %v267_v32 = vadd.f32 %v266_v30, %v91_v26  ;;  %v227_v33 = vpop.f32.mrb[1].mxu0  ;;  %v268_v34 = vpop.f32.mrb[1].mxu1 }
  0xeb   :  { %v228_v37 = vadd.f32 %v227_v33, %v87_v27  ;;  %v269_v38 = vadd.f32 %v268_v34, %v95_v28  ;;  %v229_v39 = vpop.f32.mrb[2].mxu0  ;;  %v270_v40 = vpop.f32.mrb[2].mxu1 }
  0xec   :  { %v354_v42 = vmax.f32 %v226_v31, 0.0  ;;  %v356_v43 = vmax.f32 %v267_v32, 0.0  ;;  %v230_v44 = vpop.f32.mrb[3].mxu0  ;;  %v271_v45 = vpop.f32.mrb[3].mxu1 }
  0xed   :  { %v355_v46 = vmax.f32 %v228_v37, 0.0  ;;  %v357_v47 = vmax.f32 %v269_v38, 0.0 }
  0xee   :  { %v1872_v48 = vpack.c.bf16 %v354_v42, %v354_v42  ;;  %v1874_v49 = vpack.c.bf16 %v356_v43, %v356_v43 }
  0xef   :  { %v362_v52 = vpack.c.bf16 %v355_v46, %v355_v46  ;;  %v1876_v53 = vpack.c.bf16 %v357_v47, %v357_v47 }
  0xf1   :  { %v307_v55 = vpop.f32.mrb[4].mxu0  ;;  %v348_v56 = vpop.f32.mrb[4].mxu1 }
  0xf2   :  { %v308_v57 = vadd.f32 %v307_v55, %v99_v50  ;;  %v349_v58 = vadd.f32 %v348_v56, %v107_v51  ;;  %v309_v59 = vpop.f32.mrb[5].mxu0  ;;  %v1634_v60 = vpop.f32.mrb[5].mxu1 }
  0xf3   :  { %v310_v61 = vadd.f32 %v309_v59, %v103_v54  ;;  %v311_v62 = vpop.f32.mrb[6].mxu0  ;;  %v351_v63 = vpop.f32.mrb[6].mxu1 }
  0xf4   :  { %v358_v1 = vmax.f32 %v308_v57, 0.0  ;;  %v360_v2 = vmax.f32 %v349_v58, 0.0  ;;  %v312_v3 = vpop.f32.mrb[7].mxu0  ;;  %v1635_v4 = vpop.f32.mrb[7].mxu1 }
  0xf5   :  { %v359_v5 = vmax.f32 %v310_v61, 0.0 }
  0xf6   :  { %v365_v6 = vpack.c.bf16 %v358_v1, %v358_v1  ;;  %v367_v7 = vpack.c.bf16 %v360_v2, %v360_v2 }
  0xf7   :  { %v366_v8 = vpack.c.bf16 %v359_v5, %v359_v5 }
  0xf8   :  { %1741 = dma.done.wait [#allocation3], 19200 }
  0xf9   :  { %1742 = vsyncadd [#allocation3], 4294948096  ;;  %583 = vmatprep.mubr.bf16.mxu1 %v362_v52  ;;  %501 = vmatprep.mubr.bf16.mxu0 %v362_v52  ;;  %s1756_s2 = smov 112   ;;  %v374_v9 = vld [vmem:[#allocation2 + $0x8] sm:$0xff]  ;;  %v399_v10 = vld [vmem:[#allocation2 + $0xd0] sm:$0xff]  ;;  %vm465_vm2 = vcmask 130048  }
  0xfa   :  { %731 = vrot.lane.b32.xlu0 %v365_v6, %s1756_s2  ;;  %729 = vrot.lane.b32.xlu1 %v1876_v53, %s1756_s2  ;;  %v373_v11 = vld [vmem:[#allocation2] sm:$0xff]  ;;  %v375_v12 = vld [vmem:[#allocation2 + $0x10] sm:$0xff]  ;;  %v402_v15 = vld [vmem:[#allocation2 + $0xe8] sm:$0xff]  ;;  %vm737_vm3 = vcmask 916480   ;;  %vm1076_vm4 = vcmask 1045504   ;;  %vm1072_vm5 = vcmask 359424  }
  0xfb   :  { %469 = vmatprep.subr.bf16.mxu0 %v374_v9  ;;  %1532 = vmatprep.subr.bf16.mxu1 %v399_v10  ;;  %v377_v13 = vld [vmem:[#allocation2 + $0x20] sm:$0xff]  ;;  %v376_v16 = vld [vmem:[#allocation2 + $0x18] sm:$0xff]  ;;  %v378_v17 = vld [vmem:[#allocation2 + $0x28] sm:$0xff]  ;;  %vm1402_vm6 = vcmask 7168   ;;  %vm1412_vm7 = vcmask 15360  }
  0xfc   :  { %470 = vmatpush1.bf16.msra.mxu0 %v373_v11  ;;  %1533 = vmatpush3.bf16.msra.mxu1 %v375_v12  ;;  %v380_v18 = vld [vmem:[#allocation2 + $0x38] sm:$0xff]  ;;  %v405_v19 = vld [vmem:[#allocation2 + $0x100] sm:$0xff]  ;;  %v379_v22 = vld [vmem:[#allocation2 + $0x30] sm:$0xff] }
  0xfd   :  { %471 = vmatprep.subr.bf16.mxu0 %v377_v13  ;;  %1534 = vmatprep.subr.bf16.mxu1 %v402_v15  ;;  %v381_v24 = vld [vmem:[#allocation2 + $0x40] sm:$0xff]  ;;  %v383_v25 = vld [vmem:[#allocation2 + $0x50] sm:$0xff]  ;;  %v408_v26 = vld [vmem:[#allocation2 + $0x118] sm:$0xff] }
  0xfe   :  { %733 = vrot.lane.b32.xlu0 %v366_v8, %s1756_s2  ;;  %735 = vrot.lane.b32.xlu1 %v367_v7, %s1756_s2  ;;  %v382_v27 = vld [vmem:[#allocation2 + $0x48] sm:$0xff]  ;;  %v384_v28 = vld [vmem:[#allocation2 + $0x58] sm:$0xff]  ;;  %v411_v30 = vld [vmem:[#allocation2 + $0x130] sm:$0xff] }
  0xff   :  { %v386_v29 = vld [vmem:[#allocation2 + $0x68] sm:$0xff]  ;;  %v385_v31 = vld [vmem:[#allocation2 + $0x60] sm:$0xff]  ;;  %v387_v32 = vld [vmem:[#allocation2 + $0x70] sm:$0xff] }
 0x100   :  { %472 = vmatpush1.bf16.msra.mxu0 %v376_v16  ;;  %1535 = vmatpush3.bf16.msra.mxu1 %v378_v17  ;;  %v389_v33 = vld [vmem:[#allocation2 + $0x80] sm:$0xff]  ;;  %v414_v34 = vld [vmem:[#allocation2 + $0x148] sm:$0xff]  ;;  %v388_v35 = vld [vmem:[#allocation2 + $0x78] sm:$0xff] }
 0x101   :  { %473 = vmatprep.subr.bf16.mxu0 %v380_v18  ;;  %1536 = vmatprep.subr.bf16.mxu1 %v405_v19  ;;  %v390_v36 = vld [vmem:[#allocation2 + $0x88] sm:$0xff]  ;;  %v392_v37 = vld [vmem:[#allocation2 + $0x98] sm:$0xff]  ;;  %v417_v38 = vld [vmem:[#allocation2 + $0x160] sm:$0xff] }
 0x102   :  { %v391_v39 = vld [vmem:[#allocation2 + $0x90] sm:$0xff]  ;;  %v393_v40 = vld [vmem:[#allocation2 + $0xa0] sm:$0xff]  ;;  %v420_v42 = vld [vmem:[#allocation2 + $0x178] sm:$0xff] }
 0x103   :  { %v395_v41 = vld [vmem:[#allocation2 + $0xb0] sm:$0xff]  ;;  %v394_v43 = vld [vmem:[#allocation2 + $0xa8] sm:$0xff]  ;;  %v396_v44 = vld [vmem:[#allocation2 + $0xb8] sm:$0xff] }
 0x104   :  { %474 = vmatpush1.bf16.msra.mxu0 %v379_v22  ;;  %1537 = vmatpush3.bf16.msra.mxu1 %v381_v24  ;;  %v398_v45 = vld [vmem:[#allocation2 + $0xc8] sm:$0xff]  ;;  %v397_v46 = vld [vmem:[#allocation2 + $0xc0] sm:$0xff]  ;;  %v423_v47 = vld [vmem:[#allocation2 + $0x190] sm:$0xff] }
 0x105   :  { %475 = vmatprep.subr.bf16.mxu0 %v383_v25  ;;  %1538 = vmatprep.subr.bf16.mxu1 %v408_v26  ;;  %v401_v50 = vld [vmem:[#allocation2 + $0xe0] sm:$0xff]  ;;  %v400_v51 = vld [vmem:[#allocation2 + $0xd8] sm:$0xff]  ;;  %v426_v52 = vld [vmem:[#allocation2 + $0x1a8] sm:$0xff] }
 0x106   :  { %v404_v54 = vld [vmem:[#allocation2 + $0xf8] sm:$0xff]  ;;  %v403_v55 = vld [vmem:[#allocation2 + $0xf0] sm:$0xff]  ;;  %v429_v56 = vld [vmem:[#allocation2 + $0x1c0] sm:$0xff] }
 0x107   :  { %v407_v57 = vld [vmem:[#allocation2 + $0x110] sm:$0xff]  ;;  %v406_v58 = vld [vmem:[#allocation2 + $0x108] sm:$0xff]  ;;  %v432_v59 = vld [vmem:[#allocation2 + $0x1d8] sm:$0xff] }
 0x108   :  { %476 = vmatpush1.bf16.msra.mxu0 %v382_v27  ;;  %1539 = vmatpush3.bf16.msra.mxu1 %v384_v28  ;;  %v410_v60 = vld [vmem:[#allocation2 + $0x128] sm:$0xff]  ;;  %v409_v61 = vld [vmem:[#allocation2 + $0x120] sm:$0xff]  ;;  %v435_v62 = vld [vmem:[#allocation2 + $0x1f0] sm:$0xff] }
 0x109   :  { %477 = vmatprep.subr.bf16.mxu0 %v386_v29  ;;  %1540 = vmatprep.subr.bf16.mxu1 %v411_v30  ;;  %v413_v63 = vld [vmem:[#allocation2 + $0x140] sm:$0xff]  ;;  %v412_v1 = vld [vmem:[#allocation2 + $0x138] sm:$0xff]  ;;  %v438_v2 = vld [vmem:[#allocation2 + $0x208] sm:$0xff] }
 0x10a   :  { %v416_v3 = vld [vmem:[#allocation2 + $0x158] sm:$0xff]  ;;  %v415_v4 = vld [vmem:[#allocation2 + $0x150] sm:$0xff]  ;;  %v441_v5 = vld [vmem:[#allocation2 + $0x220] sm:$0xff] }
 0x10b   :  { %v419_v6 = vld [vmem:[#allocation2 + $0x170] sm:$0xff]  ;;  %v418_v7 = vld [vmem:[#allocation2 + $0x168] sm:$0xff]  ;;  %v444_v8 = vld [vmem:[#allocation2 + $0x238] sm:$0xff] }
 0x10c   :  { %478 = vmatpush1.bf16.msra.mxu0 %v385_v31  ;;  %1541 = vmatpush3.bf16.msra.mxu1 %v387_v32  ;;  %v422_v9 = vld [vmem:[#allocation2 + $0x188] sm:$0xff]  ;;  %v421_v10 = vld [vmem:[#allocation2 + $0x180] sm:$0xff]  ;;  %v447_v11 = vld [vmem:[#allocation2 + $0x250] sm:$0xff] }
 0x10d   :  { %479 = vmatprep.subr.bf16.mxu0 %v389_v33  ;;  %1542 = vmatprep.subr.bf16.mxu1 %v414_v34  ;;  %v425_v12 = vld [vmem:[#allocation2 + $0x1a0] sm:$0xff]  ;;  %v424_v15 = vld [vmem:[#allocation2 + $0x198] sm:$0xff]  ;;  %v427_v19 = vld [vmem:[#allocation2 + $0x1b0] sm:$0xff] }
 0x10e   :  { %v633_v13 = vld [vmem:[#allocation2 + $0x260] sm:$0xff]  ;;  %v632_v16 = vld [vmem:[#allocation2 + $0x258] sm:$0xff]  ;;  %v635_v22 = vld [vmem:[#allocation2 + $0x270] sm:$0xff] }
 0x10f   :  { %v428_v17 = vld [vmem:[#allocation2 + $0x1b8] sm:$0xff]  ;;  %v431_v24 = vld [vmem:[#allocation2 + $0x1d0] sm:$0xff]  ;;  %v638_v26 = vld [vmem:[#allocation2 + $0x288] sm:$0xff] }
 0x110   :  { %480 = vmatpush1.bf16.msra.mxu0 %v388_v35  ;;  %1543 = vmatpush3.bf16.msra.mxu1 %v390_v36  ;;  %v636_v18 = vld [vmem:[#allocation2 + $0x278] sm:$0xff]  ;;  %v639_v25 = vld [vmem:[#allocation2 + $0x290] sm:$0xff]  ;;  %v434_v27 = vld [vmem:[#allocation2 + $0x1e8] sm:$0xff] }
 0x111   :  { %481 = vmatprep.subr.bf16.mxu0 %v392_v37  ;;  %1544 = vmatprep.subr.bf16.mxu1 %v417_v38  ;;  %v642_v28 = vld [vmem:[#allocation2 + $0x2a8] sm:$0xff]  ;;  %v641_v29 = vld [vmem:[#allocation2 + $0x2a0] sm:$0xff]  ;;  %v436_v32 = vld [vmem:[#allocation2 + $0x1f8] sm:$0xff] }
 0x112   :  { %v437_v30 = vld [vmem:[#allocation2 + $0x200] sm:$0xff]  ;;  %v644_v33 = vld [vmem:[#allocation2 + $0x2b8] sm:$0xff]  ;;  %v439_v36 = vld [vmem:[#allocation2 + $0x210] sm:$0xff] }
 0x113   :  { %v645_v31 = vld [vmem:[#allocation2 + $0x2c0] sm:$0xff]  ;;  %v440_v34 = vld [vmem:[#allocation2 + $0x218] sm:$0xff]  ;;  %v647_v37 = vld [vmem:[#allocation2 + $0x2d0] sm:$0xff] }
 0x114   :  { %482 = vmatpush1.bf16.msra.mxu0 %v391_v39  ;;  %1545 = vmatpush3.bf16.msra.mxu1 %v393_v40  ;;  %v648_v35 = vld [vmem:[#allocation2 + $0x2d8] sm:$0xff]  ;;  %v443_v38 = vld [vmem:[#allocation2 + $0x230] sm:$0xff]  ;;  %v442_v40 = vld [vmem:[#allocation2 + $0x228] sm:$0xff] }
 0x115   :  { %483 = vmatprep.subr.bf16.mxu0 %v395_v41  ;;  %1546 = vmatprep.subr.bf16.mxu1 %v420_v42  ;;  %v651_v39 = vld [vmem:[#allocation2 + $0x2f0] sm:$0xff]  ;;  %v650_v41 = vld [vmem:[#allocation2 + $0x2e8] sm:$0xff] }
 0x116   :  { %v446_v42 = vld [vmem:[#allocation2 + $0x248] sm:$0xff] }
 0x118   :  { %484 = vmatpush1.bf16.msra.mxu0 %v394_v43  ;;  %1547 = vmatpush3.bf16.msra.mxu1 %v396_v44  ;;  %v654_v43 = vld [vmem:[#allocation2 + $0x308] sm:$0xff]  ;;  %v445_v44 = vld [vmem:[#allocation2 + $0x240] sm:$0xff] }
 0x119   :  { %485 = vmatprep.subr.bf16.mxu0 %v398_v45  ;;  %591 = vmatprep.subr.bf16.mxu1 %v1744_v0  ;;  %v653_v45 = vld [vmem:[#allocation2 + $0x300] sm:$0xff] }
 0x11b   :  { %584 = vmatmul.mubr.bf16.vlgmr.msra.gmra.mrb[8].mxu1 %v1872_v48 }
 0x11c   :  { %486 = vmatpush1.bf16.msra.mxu0 %v397_v46  ;;  %592 = vmatpush1.bf16.msra.mxu1 %v423_v47  ;;  %v657_v46 = vld [vmem:[#allocation2 + $0x320] sm:$0xff]  ;;  %v658_v47 = vld [vmem:[#allocation2 + $0x328] sm:$0xff] }
 0x11d   :  { %487 = vmatprep.subr.bf16.mxu0 %v401_v50  ;;  %593 = vmatprep.subr.bf16.mxu1 %v1744_v0  ;;  %v656_v50 = vld [vmem:[#allocation2 + $0x318] sm:$0xff] }
 0x11e   :  { %1445 = vmatprep.mubr.msk.bf16.mxu1 %vm465_vm2, %v1876_v53 }
 0x120   :  { %488 = vmatpush1.bf16.msra.mxu0 %v400_v51  ;;  %594 = vmatpush1.bf16.msra.mxu1 %v426_v52  ;;  %v634_v51 = vld [vmem:[#allocation2 + $0x268] sm:$0xff]  ;;  %v660_v52 = vld [vmem:[#allocation2 + $0x338] sm:$0xff] }
 0x121   :  { %489 = vmatprep.subr.bf16.mxu0 %v404_v54  ;;  %595 = vmatprep.subr.bf16.mxu1 %v1744_v0  ;;  %v661_v54 = vld [vmem:[#allocation2 + $0x340] sm:$0xff] }
 0x124   :  { %490 = vmatpush1.bf16.msra.mxu0 %v403_v55  ;;  %596 = vmatpush1.bf16.msra.mxu1 %v429_v56  ;;  %v659_v55 = vld [vmem:[#allocation2 + $0x330] sm:$0xff]  ;;  %v637_v56 = vld [vmem:[#allocation2 + $0x280] sm:$0xff] }
 0x125   :  { %491 = vmatprep.subr.bf16.mxu0 %v407_v57  ;;  %597 = vmatprep.subr.bf16.mxu1 %v1744_v0  ;;  %v663_v57 = vld [vmem:[#allocation2 + $0x350] sm:$0xff] }
 0x128   :  { %492 = vmatpush1.bf16.msra.mxu0 %v406_v58  ;;  %598 = vmatpush1.bf16.msra.mxu1 %v432_v59  ;;  %v664_v58 = vld [vmem:[#allocation2 + $0x358] sm:$0xff]  ;;  %v662_v59 = vld [vmem:[#allocation2 + $0x348] sm:$0xff] }
 0x129   :  { %493 = vmatprep.subr.bf16.mxu0 %v410_v60  ;;  %599 = vmatprep.subr.bf16.mxu1 %v1744_v0  ;;  %v640_v60 = vld [vmem:[#allocation2 + $0x298] sm:$0xff] }
 0x12c   :  { %494 = vmatpush1.bf16.msra.mxu0 %v409_v61  ;;  %600 = vmatpush1.bf16.msra.mxu1 %v435_v62  ;;  %v666_v61 = vld [vmem:[#allocation2 + $0x368] sm:$0xff]  ;;  %v667_v62 = vld [vmem:[#allocation2 + $0x370] sm:$0xff] }
 0x12d   :  { %495 = vmatprep.subr.bf16.mxu0 %v413_v63  ;;  %601 = vmatprep.subr.bf16.mxu1 %v1744_v0 }
 0x130   :  { %496 = vmatpush1.bf16.msra.mxu0 %v412_v1  ;;  %602 = vmatpush1.bf16.msra.mxu1 %v438_v2  ;;  %v643_v1 = vld [vmem:[#allocation2 + $0x2b0] sm:$0xff]  ;;  %v669_v2 = vld [vmem:[#allocation2 + $0x380] sm:$0xff] }
 0x131   :  { %497 = vmatprep.subr.bf16.mxu0 %v416_v3  ;;  %603 = vmatprep.subr.bf16.mxu1 %v1744_v0  ;;  %v670_v3 = vld [vmem:[#allocation2 + $0x388] sm:$0xff] }
 0x134   :  { %498 = vmatpush1.bf16.msra.mxu0 %v415_v4  ;;  %604 = vmatpush1.bf16.msra.mxu1 %v441_v5 }
 0x135   :  { %499 = vmatprep.subr.bf16.mxu0 %v419_v6  ;;  %605 = vmatprep.subr.bf16.mxu1 %v1744_v0  ;;  %v668_v6 = vld [vmem:[#allocation2 + $0x378] sm:$0xff] }
 0x138   :  { %500 = vmatpush1.bf16.msra.mxu0 %v418_v7  ;;  %606 = vmatpush1.bf16.msra.mxu1 %v444_v8  ;;  %v646_v7 = vld [vmem:[#allocation2 + $0x2c8] sm:$0xff]  ;;  %v672_v8 = vld [vmem:[#allocation2 + $0x398] sm:$0xff] }
 0x139   :  { %510 = vmatprep.subr.bf16.mxu0 %v422_v9  ;;  %607 = vmatprep.subr.bf16.mxu1 %v1744_v0  ;;  %v673_v9 = vld [vmem:[#allocation2 + $0x3a0] sm:$0xff] }
 0x13b   :  { %502 = vmatmul.mubr.bf16.vlgmr.msra.gmra.mrb[8].mxu0 %v1872_v48  ;;  %v430_v48 = vld [vmem:[#allocation2 + $0x1c8] sm:$0xff] }
 0x13c   :  { %511 = vmatpush1.bf16.msra.mxu0 %v421_v10  ;;  %608 = vmatpush1.bf16.msra.mxu1 %v447_v11  ;;  %v671_v10 = vld [vmem:[#allocation2 + $0x390] sm:$0xff]  ;;  %v649_v11 = vld [vmem:[#allocation2 + $0x2e0] sm:$0xff] }
 0x13d   :  { %512 = vmatprep.subr.bf16.mxu0 %v425_v12  ;;  %747 = vmatprep.subr.bf16.mxu1 %v633_v13  ;;  %v675_v12 = vld [vmem:[#allocation2 + $0x3b0] sm:$0xff]  ;;  %v676_v13 = vld [vmem:[#allocation2 + $0x3b8] sm:$0xff] }
 0x13e   :  { %1444 = vmatprep.mubr.msk.bf16.mxu0 %vm465_vm2, %v1876_v53  ;;  %v433_v53 = vld [vmem:[#allocation2 + $0x1e0] sm:$0xff] }
 0x13f   :  { %624 = vmatmul.mubr.bf16.vlgmr.msra.gmra.mrb[12].mxu1 %v1874_v49 }
 0x140   :  { %513 = vmatpush1.bf16.msra.mxu0 %v424_v15  ;;  %748 = vmatpush1.bf16.msra.mxu1 %v632_v16  ;;  %v674_v15 = vld [vmem:[#allocation2 + $0x3a8] sm:$0xff]  ;;  %v652_v16 = vld [vmem:[#allocation2 + $0x2f8] sm:$0xff] }
 0x141   :  { %514 = vmatprep.subr.bf16.mxu0 %v428_v17  ;;  %749 = vmatprep.subr.bf16.mxu1 %v636_v18  ;;  %v678_v17 = vld [vmem:[#allocation2 + $0x3c8] sm:$0xff]  ;;  %v679_v18 = vld [vmem:[#allocation2 + $0x3d0] sm:$0xff] }
 0x144   :  { %515 = vmatpush1.bf16.msra.mxu0 %v427_v19  ;;  %750 = vmatpush1.bf16.msra.mxu1 %v635_v22  ;;  %v677_v19 = vld [vmem:[#allocation2 + $0x3c0] sm:$0xff]  ;;  %v655_v22 = vld [vmem:[#allocation2 + $0x310] sm:$0xff] }
 0x145   :  { %516 = vmatprep.subr.bf16.mxu0 %v431_v24  ;;  %751 = vmatprep.subr.bf16.mxu1 %v639_v25  ;;  %v681_v24 = vld [vmem:[#allocation2 + $0x3e0] sm:$0xff] }
 0x148   :  { %517 = vmatpush1.bf16.msra.mxu0 %v430_v48  ;;  %752 = vmatpush1.bf16.msra.mxu1 %v638_v26  ;;  %v680_v48 = vld [vmem:[#allocation2 + $0x3d8] sm:$0xff]  ;;  %v682_v26 = vld [vmem:[#allocation2 + $0x3e8] sm:$0xff] }
 0x149   :  { %518 = vmatprep.subr.bf16.mxu0 %v434_v27  ;;  %753 = vmatprep.subr.bf16.mxu1 %v642_v28  ;;  %v684_v28 = vld [vmem:[#allocation2 + $0x3f8] sm:$0xff] }
 0x14c   :  { %519 = vmatpush1.bf16.msra.mxu0 %v433_v53  ;;  %754 = vmatpush1.bf16.msra.mxu1 %v641_v29  ;;  %v683_v29 = vld [vmem:[#allocation2 + $0x3f0] sm:$0xff] }
 0x14d   :  { %520 = vmatprep.subr.bf16.mxu0 %v437_v30  ;;  %755 = vmatprep.subr.bf16.mxu1 %v645_v31  ;;  %v685_v30 = vld [vmem:[#allocation2 + $0x400] sm:$0xff]  ;;  %v687_v31 = vld [vmem:[#allocation2 + $0x410] sm:$0xff] }
 0x150   :  { %521 = vmatpush1.bf16.msra.mxu0 %v436_v32  ;;  %756 = vmatpush1.bf16.msra.mxu1 %v644_v33  ;;  %v686_v32 = vld [vmem:[#allocation2 + $0x408] sm:$0xff]  ;;  %v688_v33 = vld [vmem:[#allocation2 + $0x418] sm:$0xff] }
 0x151   :  { %522 = vmatprep.subr.bf16.mxu0 %v440_v34  ;;  %757 = vmatprep.subr.bf16.mxu1 %v648_v35  ;;  %v690_v34 = vld [vmem:[#allocation2 + $0x428] sm:$0xff]  ;;  %v689_v35 = vld [vmem:[#allocation2 + $0x420] sm:$0xff] }
 0x154   :  { %523 = vmatpush1.bf16.msra.mxu0 %v439_v36  ;;  %758 = vmatpush1.bf16.msra.mxu1 %v647_v37  ;;  %v691_v36 = vld [vmem:[#allocation2 + $0x430] sm:$0xff]  ;;  %v693_v37 = vld [vmem:[#allocation2 + $0x440] sm:$0xff] }
 0x155   :  { %524 = vmatprep.subr.bf16.mxu0 %v443_v38  ;;  %759 = vmatprep.subr.bf16.mxu1 %v651_v39  ;;  %v692_v38 = vld [vmem:[#allocation2 + $0x438] sm:$0xff]  ;;  %v694_v39 = vld [vmem:[#allocation2 + $0x448] sm:$0xff] }
 0x158   :  { %525 = vmatpush1.bf16.msra.mxu0 %v442_v40  ;;  %760 = vmatpush1.bf16.msra.mxu1 %v650_v41  ;;  %v696_v40 = vld [vmem:[#allocation2 + $0x458] sm:$0xff]  ;;  %v695_v41 = vld [vmem:[#allocation2 + $0x450] sm:$0xff] }
 0x159   :  { %526 = vmatprep.subr.bf16.mxu0 %v446_v42  ;;  %761 = vmatprep.subr.bf16.mxu1 %v654_v43  ;;  %v697_v42 = vld [vmem:[#allocation2 + $0x460] sm:$0xff]  ;;  %v699_v43 = vld [vmem:[#allocation2 + $0x470] sm:$0xff] }
 0x15c   :  { %527 = vmatpush1.bf16.msra.mxu0 %v445_v44  ;;  %762 = vmatpush1.bf16.msra.mxu1 %v653_v45  ;;  %v698_v44 = vld [vmem:[#allocation2 + $0x468] sm:$0xff]  ;;  %v700_v45 = vld [vmem:[#allocation2 + $0x478] sm:$0xff] }
 0x15d   :  { %763 = vmatprep.subr.bf16.mxu1 %v657_v46  ;;  %1554 = vmatprep.subr.bf16.mxu0 %v658_v47  ;;  %v702_v46 = vld [vmem:[#allocation2 + $0x488] sm:$0xff]  ;;  %v701_v47 = vld [vmem:[#allocation2 + $0x480] sm:$0xff] }
 0x15f   :  { %543 = vmatmul.mubr.bf16.vlgmr.msra.gmra.mrb[8].mxu0 %v1874_v49  ;;  %v665_v49 = vld [vmem:[#allocation2 + $0x360] sm:$0xff] }
 0x160   :  { %764 = vmatpush1.bf16.msra.mxu1 %v656_v50  ;;  %1555 = vmatpush3.bf16.msra.mxu0 %v634_v51  ;;  %v703_v50 = vld [vmem:[#allocation2 + $0x490] sm:$0xff]  ;;  %v705_v51 = vld [vmem:[#allocation2 + $0x4a0] sm:$0xff] }
 0x161   :  { %765 = vmatprep.subr.bf16.mxu1 %v660_v52  ;;  %1556 = vmatprep.subr.bf16.mxu0 %v661_v54  ;;  %v704_v52 = vld [vmem:[#allocation2 + $0x498] sm:$0xff]  ;;  %v706_v54 = vld [vmem:[#allocation2 + $0x4a8] sm:$0xff] }
 0x164   :  { %766 = vmatpush1.bf16.msra.mxu1 %v659_v55  ;;  %1557 = vmatpush3.bf16.msra.mxu0 %v637_v56  ;;  %v1706_v55 = vld [vmem:[%s2070_s5 + $0x40] sm:$0xff]  }
 0x165   :  { %767 = vmatprep.subr.bf16.mxu1 %v663_v57  ;;  %1558 = vmatprep.subr.bf16.mxu0 %v664_v58  ;;  %v1703_v56 = vld [vmem:[%s2070_s5 + $0x80] sm:$0xff]   ;;  %v1708_v58 = vld [vmem:[%s2070_s5 + $0x48] sm:$0xff]  }
 0x166   :  { %v1707_v57 = vld [vmem:[%s2070_s5] sm:$0xff]  }
 0x168   :  { %768 = vmatpush1.bf16.msra.mxu1 %v662_v59  ;;  %1559 = vmatpush3.bf16.msra.mxu0 %v640_v60  ;;  %v1704_v59 = vld [vmem:[%s2070_s5 + $0x88] sm:$0xff]   ;;  %v1705_v60 = vld [vmem:[%s2070_s5 + $0x90] sm:$0x3f]  }
 0x169   :  { %769 = vmatprep.subr.bf16.mxu1 %v666_v61  ;;  %1560 = vmatprep.subr.bf16.mxu0 %v667_v62  ;;  %v1709_v61 = vld [vmem:[%s2070_s5 + $0x8] sm:$0xff]   ;;  %v1710_v62 = vld [vmem:[%s2070_s5 + $0x50] sm:$0xff]  }
 0x16c   :  { %v732_v63 = vpop.permute.xlu0 %731  ;;  %770 = vmatpush1.bf16.msra.mxu1 %v665_v49  ;;  %1561 = vmatpush3.bf16.msra.mxu0 %v643_v1  ;;  %v730_v25 = vpop.permute.xlu1 %729  ;;  %v1711_v49 = vld [vmem:[%s2070_s5 + $0x10] sm:$0xff]   ;;  %v1712_v1 = vld [vmem:[%s2070_s5 + $0x58] sm:$0xff]  }
 0x16d   :  { %771 = vmatprep.subr.bf16.mxu1 %v669_v2  ;;  %1562 = vmatprep.subr.bf16.mxu0 %v670_v3  ;;  %v738_v27 = vsel %vm737_vm3, %v730_v25, %v732_v63  ;;  %v1713_v2 = vld [vmem:[%s2070_s5 + $0x18] sm:$0xff]   ;;  %v1714_v3 = vld [vmem:[%s2070_s5 + $0x60] sm:$0xff]  }
 0x170   :  { %v1896_v4 = vpop.permute.xlu0 %733  ;;  %772 = vmatpush1.bf16.msra.mxu1 %v668_v6  ;;  %1563 = vmatpush3.bf16.msra.mxu0 %v646_v7  ;;  %v1902_v53 = vpop.permute.xlu1 %735  ;;  %v1717_v6 = vld [vmem:[%s2070_s5 + $0x28] sm:$0xff]   ;;  %v1718_v7 = vld [vmem:[%s2070_s5 + $0x70] sm:$0xff]  }
 0x171   :  { %v739_v5 = vsel %vm737_vm3, %v732_v63, %v1896_v4  ;;  %773 = vmatprep.subr.bf16.mxu1 %v672_v8  ;;  %1564 = vmatprep.subr.bf16.mxu0 %v673_v9  ;;  %v1078_v63 = vsel %vm1076_vm4, %v1705_v60, 0  ;;  %v1719_v8 = vld [vmem:[%s2070_s5 + $0x30] sm:$0xff]   ;;  %v1720_v9 = vld [vmem:[%s2070_s5 + $0x78] sm:$0xff]   ;;  %v1738_v60 = vld [vmem:[%s2070_s5 + $0x128] sm:$0x3f]  }
 0x172   :  { %779 = vmatprep.mubr.bf16.mxu1 %v739_v5  ;;  %861 = vmatprep.mubr.bf16.mxu0 %v739_v5  ;;  %v1716_v5 = vld [vmem:[%s2070_s5 + $0x68] sm:$0xff]  }
 0x174   :  { %774 = vmatpush1.bf16.msra.mxu1 %v671_v10  ;;  %1565 = vmatpush3.bf16.msra.mxu0 %v649_v11  ;;  %v1721_v10 = vld [vmem:[%s2070_s5 + $0x38] sm:$0xff]  }
 0x175   :  { %775 = vmatprep.subr.bf16.mxu1 %v675_v12  ;;  %1566 = vmatprep.subr.bf16.mxu0 %v676_v13  ;;  %v1722_v11 = vld [vmem:[%s2070_s5 + $0xd8] sm:$0xff]  }
 0x178   :  { %776 = vmatpush1.bf16.msra.mxu1 %v674_v15  ;;  %1567 = vmatpush3.bf16.msra.mxu0 %v652_v16 }
 0x179   :  { %777 = vmatprep.subr.bf16.mxu1 %v678_v17  ;;  %1568 = vmatprep.subr.bf16.mxu0 %v679_v18  ;;  %v448_v18 = vld [vmem:[%s2069_s4] sm:$0x7] }
 0x17c   :  { %778 = vmatpush1.bf16.msra.mxu1 %v677_v19  ;;  %1569 = vmatpush3.bf16.msra.mxu0 %v655_v22  ;;  %v461_v19 = vrot.slane %v448_v18, %v1862_v21 }
 0x17d   :  { %788 = vmatprep.subr.bf16.mxu1 %v681_v24  ;;  %869 = vmatprep.subr.bf16.mxu0 %v1744_v0 }
 0x17f   :  { %780 = vmatmul.mubr.bf16.vlgmr.msra.gmra.mrb[16].mxu1 %v738_v27  ;;  %862 = vmatmul.mubr.bf16.vlgmr.msra.gmra.mrb[12].mxu0 %v738_v27 }
 0x180   :  { %789 = vmatpush1.bf16.msra.mxu1 %v680_v48  ;;  %870 = vmatpush1.bf16.msra.mxu0 %v682_v26 }
 0x181   :  { %790 = vmatprep.subr.bf16.mxu1 %v684_v28  ;;  %871 = vmatprep.subr.bf16.mxu0 %v1744_v0 }
 0x182   :  { %1447 = vmatprep.mubr.msk.bf16.mxu1 %vm465_vm2, %v1902_v53  ;;  %1448 = vmatprep.mubr.msk.bf16.mxu0 %vm465_vm2, %v1902_v53 }
 0x184   :  { %791 = vmatpush1.bf16.msra.mxu1 %v683_v29  ;;  %872 = vmatpush1.bf16.msra.mxu0 %v685_v30  ;;  %v1724_v30 = vld [vmem:[%s2070_s5 + $0xe0] sm:$0xff]  }
 0x185   :  { %792 = vmatprep.subr.bf16.mxu1 %v687_v31  ;;  %873 = vmatprep.subr.bf16.mxu0 %v1744_v0  ;;  %v1725_v31 = vld [vmem:[%s2070_s5 + $0xa0] sm:$0xff]  }
 0x188   :  { %793 = vmatpush1.bf16.msra.mxu1 %v686_v32  ;;  %874 = vmatpush1.bf16.msra.mxu0 %v688_v33  ;;  %v1726_v32 = vld [vmem:[%s2070_s5 + $0xe8] sm:$0xff]  }
 0x189   :  { %794 = vmatprep.subr.bf16.mxu1 %v690_v34  ;;  %875 = vmatprep.subr.bf16.mxu0 %v1744_v0  ;;  %v1727_v33 = vld [vmem:[%s2070_s5 + $0xa8] sm:$0xff]   ;;  %v1728_v34 = vld [vmem:[%s2070_s5 + $0xf0] sm:$0xff]  }
 0x18c   :  { %795 = vmatpush1.bf16.msra.mxu1 %v689_v35  ;;  %876 = vmatpush1.bf16.msra.mxu0 %v691_v36  ;;  %v1729_v35 = vld [vmem:[%s2070_s5 + $0xb0] sm:$0xff]   ;;  %v1730_v36 = vld [vmem:[%s2070_s5 + $0xf8] sm:$0xff]  }
 0x18d   :  { %796 = vmatprep.subr.bf16.mxu1 %v693_v37  ;;  %877 = vmatprep.subr.bf16.mxu0 %v1744_v0  ;;  %v1731_v37 = vld [vmem:[%s2070_s5 + $0xb8] sm:$0xff]  }
 0x190   :  { %797 = vmatpush1.bf16.msra.mxu1 %v692_v38  ;;  %878 = vmatpush1.bf16.msra.mxu0 %v694_v39  ;;  %v1733_v38 = vld [vmem:[%s2070_s5 + $0x100] sm:$0xff]  }
 0x191   :  { %798 = vmatprep.subr.bf16.mxu1 %v696_v40  ;;  %879 = vmatprep.subr.bf16.mxu0 %v1744_v0  ;;  %v1734_v39 = vld [vmem:[%s2070_s5 + $0xc0] sm:$0xff]   ;;  %v1736_v40 = vld [vmem:[%s2070_s5 + $0x108] sm:$0xff]  }
 0x194   :  { %799 = vmatpush1.bf16.msra.mxu1 %v695_v41  ;;  %880 = vmatpush1.bf16.msra.mxu0 %v697_v42  ;;  %v1737_v41 = vld [vmem:[%s2070_s5 + $0xc8] sm:$0xff]   ;;  %v453_v42 = vrot.slane %v448_v18, %v1860_v20 }
 0x195   :  { %800 = vmatprep.subr.bf16.mxu1 %v699_v43  ;;  %881 = vmatprep.subr.bf16.mxu0 %v1744_v0  ;;  %v1739_v43 = vld [vmem:[%s2070_s5 + $0x110] sm:$0xff]  }
 0x198   :  { %801 = vmatpush1.bf16.msra.mxu1 %v698_v44  ;;  %882 = vmatpush1.bf16.msra.mxu0 %v700_v45  ;;  %v457_v44 = vrot.slane %v448_v18, %v1867_v23 }
 0x199   :  { %802 = vmatprep.subr.bf16.mxu1 %v702_v46  ;;  %883 = vmatprep.subr.bf16.mxu0 %v1744_v0  ;;  %v1740_v46 = vld [vmem:[%s2070_s5 + $0xd0] sm:$0xff]  }
 0x19c   :  { %803 = vmatpush1.bf16.msra.mxu1 %v701_v47  ;;  %884 = vmatpush1.bf16.msra.mxu0 %v703_v50 }
 0x19d   :  { %804 = vmatprep.subr.bf16.mxu1 %v705_v51  ;;  %885 = vmatprep.subr.bf16.mxu0 %v1744_v0  ;;  %v740_v0 = vsel %vm737_vm3, %v1896_v4, %v1902_v53  ;;  %v1715_v4 = vld [vmem:[%s2070_s5 + $0x20] sm:$0xff]   ;;  %v1723_v53 = vld [vmem:[%s2070_s5 + $0x98] sm:$0xff]  }
 0x1a0   :  { %805 = vmatpush1.bf16.msra.mxu1 %v704_v52  ;;  %886 = vmatpush1.bf16.msra.mxu0 %v706_v54 }
 0x1a1   :  { %1636 = vmatprep.subr.bf16.mxu1 %v1754_v14  ;;  %1576 = vmatprep.subr.bf16.mxu0 %v1706_v55 }
 0x1a3   :  { %821 = vmatmul.mubr.bf16.vlgmr.msra.gmra.mrb[16].mxu1 %v740_v0  ;;  %902 = vmatmul.mubr.bf16.vlgmr.msra.gmra.mrb[16].mxu0 %v740_v0  ;;  %v1732_v0 = vld [vmem:[%s2070_s5 + $0x118] sm:$0xff]  }
 0x1a4   :  { %1637 = vmatpush3.bf16.msra.mxu1 %v1703_v56  ;;  %1642 = vmatprep.mubr.msk.bf16.mxu1 %vm1755_vm1, %v1754_v14 }
 0x1a5   :  { %1638 = vmatprep.subr.bf16.mxu1 %v1754_v14  ;;  %1577 = vmatpush3.bf16.msra.mxu0 %v1707_v57 }
 0x1a6   :  { %1578 = vmatprep.subr.bf16.mxu0 %v1708_v58 }
 0x1a8   :  { %1639 = vmatpush3.bf16.msra.mxu1 %v1704_v59  ;;  %v1735_v59 = vld [vmem:[%s2070_s5 + $0x120] sm:$0xff]  }
 0x1a9   :  { %1640 = vmatprep.subr.bf16.mxu1 %v1754_v14  ;;  %1579 = vmatpush3.bf16.msra.mxu0 %v1709_v61  ;;  %v1316_v61 = vsel %vm1076_vm4, %v1738_v60, 0 }
 0x1aa   :  { %1580 = vmatprep.subr.bf16.mxu0 %v1710_v62 }
 0x1ac   :  { %1641 = vmatpush3.bf16.msra.mxu1 %v1078_v63 }
 0x1ad   :  { %1581 = vmatpush3.bf16.msra.mxu0 %v1711_v49  ;;  %1602 = vmatprep.subr.bf16.mxu1 %v1722_v11 }
 0x1ae   :  { %1582 = vmatprep.subr.bf16.mxu0 %v1712_v1 }
 0x1b1   :  { %1583 = vmatpush3.bf16.msra.mxu0 %v1713_v2 }
 0x1b2   :  { %1584 = vmatprep.subr.bf16.mxu0 %v1714_v3  ;;  %v1446_v3 = vld [vmem:[%s2069_s4 + $0x3] sm:$0x7]  ;;  %s1757_s4 = smov 1  }
 0x1b5   :  { %1585 = vmatpush3.bf16.msra.mxu0 %v1715_v4  ;;  %v721_v4 = vrot.slane %v1446_v3, %v1862_v21 }
 0x1b6   :  { %1586 = vmatprep.subr.bf16.mxu0 %v1716_v5  ;;  %v713_v5 = vrot.slane %v1446_v3, %v1860_v20 }
 0x1b9   :  { %1587 = vmatpush3.bf16.msra.mxu0 %v1717_v6  ;;  %v717_v6 = vrot.slane %v1446_v3, %v1867_v23 }
 0x1ba   :  { %1588 = vmatprep.subr.bf16.mxu0 %v1718_v7 }
 0x1bd   :  { %1589 = vmatpush3.bf16.msra.mxu0 %v1719_v8 }
 0x1be   :  { %1590 = vmatprep.subr.bf16.mxu0 %v1720_v9 }
 0x1c1   :  { %1591 = vmatpush3.bf16.msra.mxu0 %v1721_v10 }
 0x1c2   :  { %1646 = vmatprep.subr.bf16.mxu0 %v1754_v14 }
 0x1ee   :  { %v1548_v12 = vpop.f32.mrb[8].mxu1 }
 0x1ef   :  { %v1549_v13 = vpop.f32.mrb[9].mxu1 }
 0x1f0   :  { %v1550_v15 = vadd.f32 %v1549_v13, %v1548_v12  ;;  %v1551_v16 = vpop.f32.mrb[10].mxu1 }
 0x1f1   :  { %v1552_v17 = vpop.f32.mrb[11].mxu1 }
 0x1f2   :  { %v586_v22 = vadd.f32 %v1550_v15, %v461_v19 }
 0x212   :  { %v625_v24 = vpop.f32.mrb[12].mxu1 }
 0x213   :  { %v626_v25 = vadd.f32 %v625_v24, %v586_v22  ;;  %v627_v48 = vpop.f32.mrb[13].mxu1 }
 0x214   :  { %v628_v26 = vpop.f32.mrb[14].mxu1 }
 0x215   :  { %v911_v27 = vmax.f32 %v626_v25, 0.0  ;;  %v629_v28 = vpop.f32.mrb[15].mxu1 }
 0x217   :  { %v914_v29 = vpack.c.bf16 %v911_v27, %v911_v27 }
 0x219   :  { %1643 = vmatmul.mubr.msk.bf16.vlgmr.msra.gmra.mrb[20].mxu1 %vm1072_vm5, %v914_v29 }
 0x21a   :  { %1603 = vmatpush3.bf16.msra.mxu1 %v1723_v53 }
 0x21b   :  { %1604 = vmatprep.subr.bf16.mxu1 %v1724_v30 }
 0x21e   :  { %1605 = vmatpush3.bf16.msra.mxu1 %v1725_v31 }
 0x21f   :  { %1606 = vmatprep.subr.bf16.mxu1 %v1726_v32 }
 0x222   :  { %1607 = vmatpush3.bf16.msra.mxu1 %v1727_v33 }
 0x223   :  { %1608 = vmatprep.subr.bf16.mxu1 %v1728_v34 }
 0x226   :  { %1609 = vmatpush3.bf16.msra.mxu1 %v1729_v35 }
 0x227   :  { %1610 = vmatprep.subr.bf16.mxu1 %v1730_v36 }
 0x22a   :  { %1611 = vmatpush3.bf16.msra.mxu1 %v1731_v37 }
 0x22b   :  { %1612 = vmatprep.subr.bf16.mxu1 %v1733_v38 }
 0x22e   :  { %1613 = vmatpush3.bf16.msra.mxu1 %v1734_v39 }
 0x22f   :  { %1614 = vmatprep.subr.bf16.mxu1 %v1736_v40 }
 0x232   :  { %v544_v45 = vpop.f32.mrb[8].mxu0  ;;  %1615 = vmatpush3.bf16.msra.mxu1 %v1737_v41 }
 0x233   :  { %v1656_v47 = vadd.f32 %v544_v45, %v453_v42  ;;  %v546_v50 = vpop.f32.mrb[9].mxu0  ;;  %1616 = vmatprep.subr.bf16.mxu1 %v1739_v43  ;;  %v1527_v43 = vld [vmem:[%s2071_s6] ss:$0 sm:$0xff] }
 0x234   :  { %v1657_v51 = vadd.f32 %v546_v50, %v457_v44  ;;  %v548_v52 = vpop.f32.mrb[10].mxu0 }
 0x235   :  { %v909_v54 = vmax.f32 %v1656_v47, 0.0  ;;  %v549_v55 = vpop.f32.mrb[11].mxu0 }
 0x236   :  { %v910_v56 = vmax.f32 %v1657_v51, 0.0  ;;  %1617 = vmatpush3.bf16.msra.mxu1 %v1740_v46 }
 0x237   :  { %v912_v58 = vpack.c.bf16 %v909_v54, %v909_v54 }
 0x238   :  { %v913_v57 = vpack.c.bf16 %v910_v56, %v910_v56 }
 0x23a   :  { %1112 = vmatprep.mubr.bf16.mxu0 %v913_v57 }
 0x23b   :  { %1113 = vmatmul.mubr.bf16.vlgmr.msra.gmra.mrb[20].mxu0 %v912_v58 }
 0x23c   :  { %1647 = vmatpush3.bf16.msra.mxu0 %v1732_v0  ;;  %1652 = vmatprep.mubr.msk.bf16.mxu0 %vm1755_vm1, %v1754_v14 }
 0x23d   :  { %1648 = vmatprep.subr.bf16.mxu0 %v1754_v14 }
 0x240   :  { %1649 = vmatpush3.bf16.msra.mxu0 %v1735_v59 }
 0x241   :  { %1650 = vmatprep.subr.bf16.mxu0 %v1754_v14 }
 0x244   :  { %1651 = vmatpush3.bf16.msra.mxu0 %v1316_v61 }
 0x252   :  { %v1570_v62 = vpop.f32.mrb[12].mxu0 }
 0x253   :  { %v1571_v63 = vpop.f32.mrb[13].mxu0 }
 0x254   :  { %v1572_v49 = vadd.f32 %v1571_v63, %v1570_v62  ;;  %v1573_v1 = vpop.f32.mrb[14].mxu0 }
 0x255   :  { %v1574_v2 = vpop.f32.mrb[15].mxu0 }
 0x256   :  { %v864_v7 = vadd.f32 %v1572_v49, %v721_v4 }
 0x276   :  { %v822_v14 = vpop.f32.mrb[16].mxu1  ;;  %v903_v8 = vpop.f32.mrb[16].mxu0 }
 0x277   :  { %v1658_v9 = vadd.f32 %v822_v14, %v713_v5  ;;  %v904_v10 = vadd.f32 %v903_v8, %v864_v7  ;;  %v824_v11 = vpop.f32.mrb[17].mxu1  ;;  %v905_v12 = vpop.f32.mrb[17].mxu0 }
 0x278   :  { %v1659_v13 = vadd.f32 %v824_v11, %v717_v6  ;;  %v826_v15 = vpop.f32.mrb[18].mxu1  ;;  %v906_v16 = vpop.f32.mrb[18].mxu0 }
 0x279   :  { %v915_v17 = vmax.f32 %v1658_v9, 0.0  ;;  %v917_v18 = vmax.f32 %v904_v10, 0.0  ;;  %v827_v19 = vpop.f32.mrb[19].mxu1  ;;  %v907_v22 = vpop.f32.mrb[19].mxu0 }
 0x27a   :  { %v916_v24 = vmax.f32 %v1659_v13, 0.0 }
 0x27b   :  { %v920_v21 = vpack.c.bf16 %v917_v18, %v917_v18  ;;  %v918_v20 = vpack.c.bf16 %v915_v17, %v915_v17 }
 0x27c   :  { %v919_v25 = vpack.c.bf16 %v916_v24, %v916_v24 }
 0x27d   :  { %1653 = vmatmul.mubr.msk.bf16.vlgmr.msra.gmra.mrb[24].mxu0 %vm1072_vm5, %v920_v21 }
 0x27e   :  { %1350 = vmatprep.mubr.bf16.mxu1 %v919_v25 }
 0x27f   :  { %1351 = vmatmul.mubr.bf16.vlgmr.msra.gmra.mrb[24].mxu1 %v918_v20 }
 0x2ec   :  { %v1154_v23 = vpop.f32.mrb[20].mxu1 }
 0x2ed   :  { %v1644_v48 = vpop.f32.mrb[21].mxu1 }
 0x2ee   :  { %v1157_v26 = vpop.f32.mrb[22].mxu1 }
 0x2ef   :  { %v1645_v27 = vpop.f32.mrb[23].mxu1 }
 0x30e   :  { %v1592_v28 = vpop.f32.mrb[20].mxu0 }
 0x30f   :  { %v1593_v53 = vpop.f32.mrb[21].mxu0 }
 0x310   :  { %v1594_v29 = vadd.f32 %v1593_v53, %v1592_v28  ;;  %v1595_v30 = vpop.f32.mrb[22].mxu0 }
 0x311   :  { %v1596_v31 = vpop.f32.mrb[23].mxu0 }
 0x312   :  { %v1155_v32 = vadd.f32 %v1594_v29, %v1154_v23 }
 0x350   :  { %v1392_v33 = vpop.f32.mrb[24].mxu0 }
 0x351   :  { %v1654_v34 = vpop.f32.mrb[25].mxu0 }
 0x352   :  { %v1618_v35 = vpop.f32.mrb[24].mxu1  ;;  %v1395_v36 = vpop.f32.mrb[26].mxu0 }
 0x353   :  { %v1619_v37 = vpop.f32.mrb[25].mxu1  ;;  %v1655_v38 = vpop.f32.mrb[27].mxu0 }
 0x354   :  { %v1620_v39 = vadd.f32 %v1619_v37, %v1618_v35  ;;  %v1621_v40 = vpop.f32.mrb[26].mxu1 }
 0x355   :  { %v1622_v41 = vpop.f32.mrb[27].mxu1 }
 0x356   :  { %v1393_v42 = vadd.f32 %v1620_v39, %v1392_v33 }
 0x358   :  { %1399 = vrot.lane.b32.xlu0 %v1393_v42, %s1757_s4 }
 0x3ca   :  { %v1400_v44 = vpop.permute.xlu0 %1399 }
 0x3cb   :  { %v1403_v45 = vsel %vm1402_vm6, %v1155_v32, %v1400_v44 }
 0x3cc   :  { %v1411_v46 = vadd.f32 %v1527_v43, %v1403_v45 }
 0x3ce   :  { %1413 = vst.msk [vmem:[%s2072_s7] sm:$0xff] %vm1412_vm7, %v1411_v46 }
 0x3cf   :  { %1418 = vsyncmov [#allocation3] }
 0x3d2   :  { %s1419_s25 = vpop.sfrf %1418 }
 0x3d3   :  { %p1528_p0 = scmp.ne.s32.totalorder %s1419_s25, 0 }
 0x3d5   :  { %1423 = shalt.err (%p1528_p0)  }

</bundles_post_ra>
